<compile_context>
chip_gen: v6e
topology: v6e:2x2x1
jax: 0.10.0
libtpu: 0.0.40
codegen_flags: <defaults>
</compile_context>

<pallas_src>
import functools
import math

import jax
import jax.numpy as jnp
from jax.experimental import pallas as pl
from jax.experimental.pallas import tpu as pltpu


def _round_up(x: int, m: int) -> int:
    return ((x + m - 1) // m) * m


def _cdiv(a: int, b: int) -> int:
    return (a + b - 1) // b


def _vmem_capacity_bytes() -> int:
    """Physical VMEM per TensorCore; conservative fallback if query fails."""
    try:
        info = pltpu.get_tpu_info()
        for name in ("vmem_capacity_bytes", "vmem_bytes", "vmem_size_bytes"):
            v = getattr(info, name, None)
            if v:
                return int(v)
    except Exception:
        pass
    return 64 * 1024 * 1024  # v7x per-TC value; safe lower bound everywhere


def _gelu_f32(y, approximate: bool):
    if approximate:
        c = math.sqrt(2.0 / math.pi)
        return 0.5 * y * (1.0 + jnp.tanh(c * (y + 0.044715 * (y * y * y))))
    return 0.5 * y * (1.0 + jax.lax.erf(y * (1.0 / math.sqrt(2.0))))


def _fc_kernel_single(x_ref, w_ref, b_ref, o_ref, *, use_gelu, approx):
    # Full K resident in VMEM: one MXU matmul + fused bias/GELU epilogue.
    y = jnp.dot(x_ref[...], w_ref[...], preferred_element_type=jnp.float32)
    y = y + b_ref[...]
    if use_gelu:
        y = _gelu_f32(y, approx)
    o_ref[...] = y.astype(o_ref.dtype)


def _fc_kernel_reduce(x_ref, w_ref, b_ref, o_ref, acc_ref, *, use_gelu, approx):
    # K-reduction accumulator pattern (grid axis 2 = reduction, "arbitrary").
    @pl.when(pl.program_id(2) == 0)
    def _():
        acc_ref[...] = jnp.zeros_like(acc_ref)

    acc_ref[...] += jnp.dot(
        x_ref[...], w_ref[...], preferred_element_type=jnp.float32
    )

    @pl.when(pl.program_id(2) == pl.num_programs(2) - 1)
    def _():
        y = acc_ref[...] + b_ref[...]
        if use_gelu:
            y = _gelu_f32(y, approx)
        o_ref[...] = y.astype(o_ref.dtype)


def _pick_tile(dim: int, target: int, quantum: int) -> int:
    """Largest tile <= ~target that minimizes padding; multiple of quantum."""
    if dim <= 0:
        return quantum
    nblocks = _cdiv(dim, target)
    return max(quantum, _round_up(_cdiv(dim, nblocks), quantum))


def fc_forward(x, weight_t, bias, *, use_gelu=True, pdrop=0.0,
               gelu_approximate=False, compute_dtype="auto",
               tm=None, tn=None, tk=None):
    """Pallas implementation of FC.forward.

    x             : (..., in_size)
    weight_t      : (in_size, out_size)   (transpose of torch linear.weight)
    bias          : (out_size,)
    compute_dtype : "auto" -> bf16 for f32 inputs (f32 accumulation kept),
                    or an explicit dtype / None to keep the input dtype.
    """
    assert pdrop == 0.0, "dropout not implemented (identity for pdrop=0)"
    K, N = weight_t.shape
    lead_shape = x.shape[:-1]
    M = math.prod(lead_shape) if lead_shape else 1
    out_dtype = x.dtype

    if compute_dtype == "auto":
        compute_dtype = jnp.bfloat16 if x.dtype == jnp.float32 else None

    x2d = x.reshape(M, K)
    w2d = weight_t
    if compute_dtype is not None:
        if x2d.dtype != compute_dtype:
            x2d = x2d.astype(compute_dtype)
        if w2d.dtype != compute_dtype:
            w2d = w2d.astype(compute_dtype)
    in_bytes = jnp.dtype(x2d.dtype).itemsize
    out_bytes = jnp.dtype(out_dtype).itemsize

    # ---- tile selection -------------------------------------------------
    Kp = _round_up(K, 128)
    tm = _pick_tile(M, 512, 8) if tm is None else _round_up(max(tm, 8), 8)
    tn = _pick_tile(N, 512, 128) if tn is None else _round_up(max(tn, 128), 128)
    tm = min(tm, _round_up(M, 8))
    tn = min(tn, _round_up(N, 128))

    # Guarantee >= 2 parallel blocks so v7x's two TensorCores both get work
    # (negligible per-step overhead on single-TC chips).
    if _cdiv(M, tm) * _cdiv(N, tn) == 1:
        if tn >= 256:
            tn //= 2
        elif tm >= 16:
            tm = _round_up(tm // 2, 8)

    Mp = _round_up(M, tm)
    Np = _round_up(N, tn)

    # ---- generation-aware VMEM budget ------------------------------------
    budget = min(3 * _vmem_capacity_bytes() // 4, 100 * 1024 * 1024)
    fixed = (2 * tm * tn * out_bytes      # double-buffered output tile
             + tm * tn * 4                # f32 acc / epilogue temp
             + 4 * tn * 4                 # bias
             + (1 << 20))                 # margin
    avail = max(budget - fixed, 2 * (tm + tn) * 128 * in_bytes)
    tk_max = max(128, (avail // (2 * (tm + tn) * in_bytes)) // 128 * 128)

    if tk is None:
        single_pass = Kp <= tk_max
        tk = Kp if single_pass else min(tk_max, 4096 if in_bytes <= 2 else 2048)
    else:
        tk = min(_round_up(max(tk, 128), 128), Kp)
        single_pass = tk >= Kp
    if not single_pass:
        Kp = _round_up(K, tk)

    # ---- pad to tile multiples (zero padding is exact for linear) -------
    if (Mp, Kp) != (M, K):
        x2d = jnp.pad(x2d, ((0, Mp - M), (0, Kp - K)))
    if (Kp, Np) != (K, N):
        w2d = jnp.pad(w2d, ((0, Kp - K), (0, Np - N)))
    b2d = bias.reshape(1, N).astype(jnp.float32)
    if Np != N:
        b2d = jnp.pad(b2d, ((0, 0), (0, Np - N)))

    cost = pl.CostEstimate(
        flops=2 * M * N * K,
        transcendentals=M * N if use_gelu else 0,
        bytes_accessed=(M * K * in_bytes + K * N * in_bytes
                        + N * 4 + M * N * out_bytes),
    )
    compiler_params = pltpu.CompilerParams(
        dimension_semantics=("parallel", "parallel") if single_pass
        else ("parallel", "parallel", "arbitrary"),
        vmem_limit_bytes=int(budget),
    )

    if single_pass:
        kernel = functools.partial(_fc_kernel_single, use_gelu=use_gelu,
                                   approx=gelu_approximate)
        # Stream the operand whose per-output-tile bytes are smaller; keep the
        # other resident across the inner grid axis.
        stream_x = tm <= tn
        if stream_x:
            grid = (Np // tn, Mp // tm)            # outer over N: W resident
            x_map = lambda j, i: (i, 0)
            w_map = lambda j, i: (0, j)
            b_map = lambda j, i: (0, j)
            o_map = lambda j, i: (i, j)
        else:
            grid = (Mp // tm, Np // tn)            # outer over M: x resident
            x_map = lambda i, j: (i, 0)
            w_map = lambda i, j: (0, j)
            b_map = lambda i, j: (0, j)
            o_map = lambda i, j: (i, j)
        out2d = pl.pallas_call(
            kernel,
            out_shape=jax.ShapeDtypeStruct((Mp, Np), out_dtype),
            grid_spec=pltpu.PrefetchScalarGridSpec(
                num_scalar_prefetch=0,
                grid=grid,
                in_specs=[
                    pl.BlockSpec((tm, Kp), x_map),   # x tile
                    pl.BlockSpec((Kp, tn), w_map),   # W tile
                    pl.BlockSpec((1, tn), b_map),    # bias
                ],
                out_specs=pl.BlockSpec((tm, tn), o_map),
            ),
            compiler_params=compiler_params,
            cost_estimate=cost,
        )(x2d, w2d, b2d)
    else:
        kernel = functools.partial(_fc_kernel_reduce, use_gelu=use_gelu,
                                   approx=gelu_approximate)
        out2d = pl.pallas_call(
            kernel,
            out_shape=jax.ShapeDtypeStruct((Mp, Np), out_dtype),
            grid_spec=pltpu.PrefetchScalarGridSpec(
                num_scalar_prefetch=0,
                grid=(Mp // tm, Np // tn, Kp // tk),
                in_specs=[
                    pl.BlockSpec((tm, tk), lambda i, j, k: (i, k)),  # x tile
                    pl.BlockSpec((tk, tn), lambda i, j, k: (k, j)),  # W tile
                    pl.BlockSpec((1, tn), lambda i, j, k: (0, j)),   # bias
                ],
                out_specs=pl.BlockSpec((tm, tn), lambda i, j, k: (i, j)),
                scratch_shapes=[pltpu.VMEM((tm, tn), jnp.float32)],
            ),
            compiler_params=compiler_params,
            cost_estimate=cost,
        )(x2d, w2d, b2d)

    out2d = out2d[:M, :N]
    return out2d.reshape(*lead_shape, N)


def _ref_fc(x, weight_t, bias, use_gelu=True):
    y = x @ weight_t + bias
    if use_gelu:
        y = jax.nn.gelu(y, approximate=False)
    return y


if __name__ == "__main__":
    key = jax.random.PRNGKey(0)

    # --- test 1: module-sized shapes, exact f32 compute path ------------
    batch, seq = 2, 8
    in_size, out_size = 128, 128
    kx, kw, kb, key = jax.random.split(key, 4)
    x = jax.random.normal(kx, (batch, seq, in_size), dtype=jnp.float32)
    bound = 1.0 / math.sqrt(in_size)
    weight = jax.random.uniform(
        kw, (out_size, in_size), minval=-bound, maxval=bound, dtype=jnp.float32
    )  # torch layout (out, in)
    bias = jax.random.uniform(
        kb, (out_size,), minval=-bound, maxval=bound, dtype=jnp.float32
    )
    weight_t = weight.T  # (in_size, out_size)

    out = fc_forward(x, weight_t, bias, use_gelu=True, pdrop=0.0,
                     compute_dtype=jnp.float32)
    out = jax.block_until_ready(out)
    ref = _ref_fc(x, weight_t, bias, use_gelu=True)
    assert out.shape == (batch, seq, out_size)
    assert jnp.allclose(out, ref, atol=1e-5, rtol=1e-5), \
        float(jnp.max(jnp.abs(out - ref)))

    # --- test 2: non-tile-multiple shapes (exercises padding path) ------
    batch2, seq2 = 2, 7
    in2, out2 = 96, 200
    kx2, kw2, kb2, key = jax.random.split(key, 4)
    x2 = jax.random.normal(kx2, (batch2, seq2, in2), dtype=jnp.float32)
    bound2 = 1.0 / math.sqrt(in2)
    w2 = jax.random.uniform(
        kw2, (out2, in2), minval=-bound2, maxval=bound2, dtype=jnp.float32
    )
    b2 = jax.random.uniform(
        kb2, (out2,), minval=-bound2, maxval=bound2, dtype=jnp.float32
    )
    out_b = fc_forward(x2, w2.T, b2, use_gelu=True, pdrop=0.0,
                       compute_dtype=jnp.float32)
    out_b = jax.block_until_ready(out_b)
    ref_b = _ref_fc(x2, w2.T, b2, use_gelu=True)
    assert out_b.shape == (batch2, seq2, out2)
    assert jnp.allclose(out_b, ref_b, atol=1e-5, rtol=1e-5), \
        float(jnp.max(jnp.abs(out_b - ref_b)))

    # --- test 3: default path (auto -> bf16 compute, f32 accumulation) --
    out_c = fc_forward(x, weight_t, bias, use_gelu=True, pdrop=0.0)
    out_c = jax.block_until_ready(out_c)
    ref_c = _ref_fc(
        x.astype(jnp.bfloat16).astype(jnp.float32),
        weight_t.astype(jnp.bfloat16).astype(jnp.float32),
        bias, use_gelu=True,
    )
    assert out_c.shape == (batch, seq, out_size)
    assert jnp.allclose(out_c, ref_c, atol=2e-2, rtol=2e-2), \
        float(jnp.max(jnp.abs(out_c - ref_c)))

    print("KERNEL_OK")
</pallas_src>

<mosaic_0001>
module attributes {stable_mosaic.version = 11 : i64} {
  func.func @_fc_kernel_single(%arg0: i32, %arg1: i32, %arg2: memref<8x128xf32, #tpu.memory_space<vmem>>, %arg3: memref<128x128xf32, #tpu.memory_space<vmem>>, %arg4: memref<1x128xf32, #tpu.memory_space<vmem>>, %arg5: memref<8x128xf32, #tpu.memory_space<vmem>>) attributes {dimension_semantics = [#tpu.dimension_semantics<parallel>, #tpu.dimension_semantics<parallel>], iteration_bounds = array<i64: 1, 2>, scalar_prefetch = 0 : i64, scratch_operands = 0 : i64, tpu.core_type = #tpu.core_type<tc>, window_params = [{transform_indices = @transform_0, window_bounds = array<i64: 8, 128>}, {transform_indices = @transform_1, window_bounds = array<i64: 128, 128>}, {transform_indices = @transform_2, window_bounds = array<i64: 1, 128>}, {transform_indices = @transform_3, window_bounds = array<i64: 8, 128>}]} {
    %c0 = arith.constant 0 : index
    %c0_0 = arith.constant 0 : index
    %0 = vector.load %arg2[%c0, %c0_0] : memref<8x128xf32, #tpu.memory_space<vmem>>, vector<8x128xf32>
    %c0_1 = arith.constant 0 : index
    %c0_2 = arith.constant 0 : index
    %1 = vector.load %arg3[%c0_1, %c0_2] : memref<128x128xf32, #tpu.memory_space<vmem>>, vector<128x128xf32>
    %cst = arith.constant dense<0.000000e+00> : vector<8x128xf32>
    %2 = tpu.matmul %0, %1, %cst {dimension_numbers = #tpu.dot_dimension_numbers<[1], [0], [0], [1], [0, 0, 1, 1], [], []>} : vector<8x128xf32>, vector<128x128xf32>, vector<8x128xf32> -> vector<8x128xf32>
    %c0_3 = arith.constant 0 : index
    %c0_4 = arith.constant 0 : index
    %3 = vector.load %arg4[%c0_3, %c0_4] : memref<1x128xf32, #tpu.memory_space<vmem>>, vector<1x128xf32>
    %4 = vector.broadcast %3 : vector<1x128xf32> to vector<8x128xf32>
    %5 = arith.addf %2, %4 : vector<8x128xf32>
    %cst_5 = arith.constant 5.000000e-01 : f32
    %6 = vector.broadcast %cst_5 : f32 to vector<8x128xf32>
    %7 = arith.mulf %6, %5 : vector<8x128xf32>
    %cst_6 = arith.constant 0.707106769 : f32
    %8 = vector.broadcast %cst_6 : f32 to vector<8x128xf32>
    %9 = arith.mulf %5, %8 : vector<8x128xf32>
    %10 = math.erf %9 : vector<8x128xf32>
    %cst_7 = arith.constant 1.000000e+00 : f32
    %11 = vector.broadcast %cst_7 : f32 to vector<8x128xf32>
    %12 = arith.addf %11, %10 : vector<8x128xf32>
    %13 = arith.mulf %7, %12 : vector<8x128xf32>
    %c0_8 = arith.constant 0 : index
    %c0_9 = arith.constant 0 : index
    %14 = vector.load %arg5[%c0_8, %c0_9] : memref<8x128xf32, #tpu.memory_space<vmem>>, vector<8x128xf32>
    tpu.vector_store %arg5[%c0_8, %c0_9], %13 {strides = array<i32>} : memref<8x128xf32, #tpu.memory_space<vmem>>, vector<8x128xf32>,
    return
  }
  func.func @transform_0(%arg0: i32, %arg1: i32) -> (i32, i32) {
    %c0_i32 = arith.constant 0 : i32
    %c0_i32_0 = arith.constant 0 : i32
    return %arg1, %c0_i32 : i32, i32
  }
  func.func @transform_1(%arg0: i32, %arg1: i32) -> (i32, i32) {
    %c0_i32 = arith.constant 0 : i32
    %c0_i32_0 = arith.constant 0 : i32
    return %c0_i32, %arg0 : i32, i32
  }
  func.func @transform_2(%arg0: i32, %arg1: i32) -> (i32, i32) {
    %c0_i32 = arith.constant 0 : i32
    %c0_i32_0 = arith.constant 0 : i32
    return %c0_i32, %arg0 : i32, i32
  }
  func.func @transform_3(%arg0: i32, %arg1: i32) -> (i32, i32) {
    %c0_i32 = arith.constant 0 : i32
    return %arg1, %arg0 : i32, i32
  }
}

</mosaic_0001>

<bundles_post_ra>
// kernel: tpu_custom_call.1
= control target key start
LH: loop header
LB: loop body
LE: loop exit
PB: predicated region body
PF: predicated region fallthrough
CT: control target
= control target key end

     0   :  { %8 = vsyncpa [#allocation3], 0  ;;  %s946_s0 = inlined_call_operand.hbm [shape: f32[16,128], index: 0, kind: input, shape index: {}]   ;;  %s947_s1 = inlined_call_operand.hbm [shape: f32[128,128], index: 1, kind: input, shape index: {}]   ;;  %s948_s2 = inlined_call_operand.vmem [shape: f32[1,128], index: 2, kind: input, shape index: {}]   ;;  %s949_s3 = inlined_call_operand.hbm [shape: f32[16,128], index: 3, kind: output, shape index: {}]  }
   0x1   :  { %10 = vsyncpa [#allocation3 + $0x1], 0 }
   0x2   :  { %11 = vsyncpa [#allocation6], 0 }
   0x3   :  { %12 = vsyncpa [#allocation4], 0 }
   0x4   :  { %14 = vsyncpa [#allocation4 + $0x1], 0  ;;  %s769_s12 = smov 0   ;;  %s771_s13 = smov 0  }
   0x5   :  { %s773_s14 = smov 0   ;;  %s775_s15 = smov 0  }
   0x6   :  { %s777_s16 = smov 0   ;;  %s779_s17 = smov 0  }
   0x7 LB: > { %s454_s18 = sadd.s32 4294967295, %s740_s17   ;;  %s455_s19 = sadd.s32 4294967294, %s740_s17   ;;  %s740_s17 = sphi %s779_s17, %s20_s17   ;;  %s736_s16 = sphi %s777_s16, %s967_s16   ;;  %s732_s15 = sphi %s775_s15, %s966_s15   ;;  %s728_s14 = sphi %s773_s14, %s965_s14   ;;  %s724_s13 = sphi %s771_s13, %s964_s13   ;;  %s720_s12 = sphi %s769_s12, %s963_s12  }
   0x8   : > { %p52_p0 = scmp.ne.s32.totalorder %s724_s13, %s720_s12  ;;  %p803_p1 = scmp.eq.s32.totalorder %s454_s18, 0 }
   0x9   : > { %p807_p2 = scmp.eq.s32.totalorder %s454_s18, 1  ;;  %p136_p3 = scmp.eq.s32.totalorder %s455_s19, 1 }
   0xa   : > { %p813_p4 = por %p803_p1, %p52_p0  ;;  %p456_p5 = scmp.ge.s32.totalorder %s740_s17, 1 }
   0xb   : > { %p818_p6 = por %p136_p3, %p52_p0  ;;  %p143_p7 = scmp.lt.s32.totalorder %s740_s17, 3 }
   0xc   : > { %s953_s22 = scalar_select %p813_p4, 1, 0 }
   0xd   : > { %s954_s23 = scalar_select %p818_p6, 1, 0 }
   0xe   : > { %p823_p8 = pnand %p456_p5, %p143_p7  ;;  %s742_s25 = smov [#allocation5]  }
   0xf   : > { %s157_s26 = sshll.u32 %s742_s25, 4  ;;  %s29_s28 = sadd.s32 1, %s736_s16  ;;  %s158_s26 = int_to_ptr.vmem [resolvable:$true] %s157_s26 }
  0x10   : > { %p531_p9 = pneg %p823_p8  ;;  %s613_s29 = scalar_lea.vmem %s158_s26, 2048 }
  0x11   : > { %p614_p13 = scmp.ne.s32.totalorder %s158_s26, %s613_s29  ;;  %p621_p5 = scmp.lt.s32.totalorder %s158_s26, %s158_s26 }
  0x12   : > { %p832_p11 = pnand %p531_p9, %p803_p1  ;;  %p622_p7 = scmp.lt.s32.totalorder %s613_s29, %s613_s29 }
  0x14   : > { %p604_p12 = pneg %p832_p11  ;;  %p623_p6 = por %p622_p7, %p621_p5 }
  0x16   : > { %p616_p0 = pnand %p614_p13, %p604_p12 }
  0x18   : > { %p617_p3 = pneg %p616_p0 }
  0x1a   : > { %p624_p4 = pnand %p623_p6, %p617_p3 }
  0x1c   : > { %627 = shalt.err (!%p624_p4)
}
  0x1d   : > { %s743_s30 = smov 128   ;;  %s744_s4 = smov 8  }
  0x1e   : > { %534 = dma.hbm_to_vmem [thread:$0]  (!%p832_p11), %s947_s1, 2048, %s158_s26, [#allocation6], %s743_s30, %s743_s30, %s744_s4  }
  0x1f   : > { %p30_p6 = scmp.ge.s32.totalorder %s29_s28, 2  ;;  %s39_s7 = sadd.s32 1, %s728_s14 }
  0x20   : > { %p46_p4 = scmp.ne.s32.totalorder %s728_s14, %s724_s13  ;;  %p47_p9 = scmp.eq.s32.totalorder %s740_s17, 0 }
  0x21   : > { %s969_s28 = smov (%p30_p6, %s29_s28), 0  ;;  %p544_p0 = scmp.lt.s32.totalorder %s740_s17, 2 }
  0x22   : > { %p850_p12 = por %p47_p9, %p46_p4  ;;  %p856_p13 = por %p807_p2, %p46_p4 }
  0x23   : > { %s36_s10 = ssub.s32 %s736_s16, %s969_s28  ;;  %s177_s11 = sand.u32 1, %s728_s14  }
  0x24   : > { %p37_p11 = scmp.eq.s32.totalorder %s36_s10, 0  ;;  %s460_s18 = sshll.u32 %s177_s11, 3 }
  0x25   : > { %s461_s25 = sshll.u32 %s736_s16, 7  ;;  %s181_s30 = scalar_lea.vmem [#allocation2], %s460_s18 }
  0x26   : > { %s865_s19 = scalar_select %p37_p11, %s728_s14, %s39_s7  }
  0x27   : > { %s186_s29 = scalar_lea.hbm %s946_s0, %s461_s25  ;;  %s188_s4 = sshll.u32 %s181_s30, 4  ;;  %s189_s4 = int_to_ptr.vmem [resolvable:$true] %s188_s4 }
  0x28   : > { %p873_p2 = pnand %p544_p0, %p850_p12  ;;  %s178_s5 = scalar_lea.sflag [#allocation3], %s177_s11 }
  0x29   : > { %s641_s6 = scalar_lea.vmem %s189_s4, 128  ;;  %s745_s7 = smov [#allocation2]  }
  0x2a   : > { %p630_p3 = pneg %p873_p2  ;;  %p642_p5 = scmp.ne.s32.totalorder %s189_s4, %s641_s6 }
  0x2b   : > { %s646_s10 = sshll.u32 %s745_s7, 4  ;;  %s647_s10 = int_to_ptr.vmem [resolvable:$false] %s646_s10 }
  0x2c   : > { %p644_p7 = pnand %p642_p5, %p630_p3  ;;  %s648_s25 = scalar_lea.vmem %s647_s10, 256 }
  0x2d   : > { %p649_p4 = scmp.lt.s32.totalorder %s189_s4, %s647_s10  ;;  %p650_p9 = scmp.lt.s32.totalorder %s648_s25, %s641_s6 }
  0x2e   : > { %p645_p6 = pneg %p644_p7 }
  0x2f   : > { %p651_p11 = por %p650_p9, %p649_p4 }
  0x31   : > { %p652_p10 = pnand %p651_p11, %p645_p6 }
  0x33   : > { %655 = shalt.err (!%p652_p10)
}
  0x34   : > { %538 = dma.hbm_to_vmem [thread:$0]  (!%p873_p2), %s186_s29, 128, %s189_s4, %s178_s5  }
  0x35   : > { %197 = sbr.rel (%p823_p8) target bundleno = 322 (0x142), region = 32  ;;  %s884_s8 = sand.u32 (!%p823_p8), 1, %s724_s13  }
  0x36   : > { %s463_s11 = sshll.u32 (!%p823_p8), %s884_s8, 3  ;;  %s200_s18 = scalar_lea.sflag (!%p823_p8), [#allocation3], %s884_s8 }
  0x37   : > { %s890_s26 = scalar_lea.vmem (!%p823_p8), [#allocation2], %s463_s11  ;;  %p960_p12 = scmp.ne.s32.totalorder (!%p823_p8), %s953_s22, 0 }
  0x3a   : > { %707 = dma.done.wait (%p960_p12), %s200_s18, 128  }
  0x3b   : > { %709 = vsyncadd (%p960_p12), %s200_s18, 4294967168 }
  0x3c   : > { %711 = dma.done.wait (%p803_p1), [#allocation6], 2048  }
  0x3d   : > { %713 = vsyncadd (%p803_p1), [#allocation6], 4294965248  ;;  %v746_v0 = vmov 0.0   ;;  %vm747_vm0 = vmmov 0   ;;  %v252_v1 = vld [vmem:[#allocation5 + $0x78] sm:$0xff]  ;;  %v251_v2 = vld [vmem:[#allocation5 + $0x70] sm:$0xff] }
  0x3e   : > { %488 = vmatprep.subr.mxu0 %v746_v0  ;;  %520 = vmatprep.mubr.msk.f32.mxu0 %vm747_vm0, %v746_v0  ;;  %v250_v3 = vld [vmem:[#allocation5 + $0x68] sm:$0xff]  ;;  %v249_v4 = vld [vmem:[#allocation5 + $0x60] sm:$0xff]  ;;  %v248_v5 = vld [vmem:[#allocation5 + $0x58] sm:$0xff]  ;;  %s468_s24 = sshll.u32 %s732_s15, 7  ;;  %s232_s27 = scalar_lea.vmem [#allocation7], %s463_s11 }
  0x3f   : > { %489 = vmatpush3.msra.mxu0 %v252_v1  ;;  %v247_v6 = vld [vmem:[#allocation5 + $0x50] sm:$0xff]  ;;  %v246_v7 = vld [vmem:[#allocation5 + $0x48] sm:$0xff]  ;;  %v245_v8 = vld [vmem:[#allocation5 + $0x40] sm:$0xff]  ;;  %s351_s29 = sshll.u32 %s232_s27, 4  ;;  %s349_s21 = scalar_lea.hbm %s949_s3, %s468_s24  ;;  %s352_s29 = int_to_ptr.vmem [resolvable:$true] %s351_s29 }
  0x40   : > { %490 = vmatprep.subr.mxu0 %v746_v0  ;;  %v244_v9 = vld [vmem:[#allocation5 + $0x38] sm:$0xff]  ;;  %v243_v10 = vld [vmem:[#allocation5 + $0x30] sm:$0xff]  ;;  %v242_v11 = vld [vmem:[#allocation5 + $0x28] sm:$0xff]  ;;  %s337_s5 = scalar_lea.sflag [#allocation4], %s884_s8  ;;  %s656_s6 = scalar_lea.vmem %s352_s29, 128 }
  0x41   : > { %491 = vmatpush3.msra.mxu0 %v251_v2  ;;  %v241_v12 = vld [vmem:[#allocation5 + $0x20] sm:$0xff]  ;;  %v240_v13 = vld [vmem:[#allocation5 + $0x18] sm:$0xff]  ;;  %v239_v14 = vld [vmem:[#allocation5 + $0x10] sm:$0xff]  ;;  %p657_p1 = scmp.ne.s32.totalorder %s352_s29, %s656_s6  ;;  %s748_s7 = smov [#allocation7]  }
  0x42   : > { %492 = vmatprep.subr.mxu0 %v746_v0  ;;  %v238_v15 = vld [vmem:[#allocation5 + $0x8] sm:$0xff]  ;;  %v237_v16 = vld [vmem:[#allocation5] sm:$0xff]  ;;  %v236_v17 = vld [vmem:[%s890_s26] sm:$0xff]  ;;  %s660_s15 = sshll.u32 %s748_s7, 4  ;;  %s661_s15 = int_to_ptr.vmem [resolvable:$false] %s660_s15 }
  0x43   : > { %493 = vmatpush3.msra.mxu0 %v250_v3  ;;  %v466_v18 = vld [vmem:[%s948_s2] ss:$0 sm:$0xff]  ;;  %p658_p8 = pnand %p657_p1, %p856_p13  ;;  %s662_s10 = scalar_lea.vmem %s661_s15, 256 }
  0x44   : > { %494 = vmatprep.subr.mxu0 %v746_v0  ;;  %p663_p0 = scmp.lt.s32.totalorder %s352_s29, %s661_s15  ;;  %p664_p2 = scmp.lt.s32.totalorder %s662_s10, %s656_s6 }
  0x45   : > { %495 = vmatpush3.msra.mxu0 %v249_v4  ;;  %p659_p10 = pneg %p658_p8 }
  0x46   : > { %496 = vmatprep.subr.mxu0 %v746_v0  ;;  %p665_p3 = por %p664_p2, %p663_p0 }
  0x47   : > { %497 = vmatpush3.msra.mxu0 %v248_v5 }
  0x48   : > { %498 = vmatprep.subr.mxu0 %v746_v0  ;;  %p666_p5 = pnand %p665_p3, %p659_p10 }
  0x49   : > { %499 = vmatpush3.msra.mxu0 %v247_v6 }
  0x4a   : > { %500 = vmatprep.subr.mxu0 %v746_v0 }
  0x4b   : > { %501 = vmatpush3.msra.mxu0 %v246_v7 }
  0x4c   : > { %502 = vmatprep.subr.mxu0 %v746_v0 }
  0x4d   : > { %503 = vmatpush3.msra.mxu0 %v245_v8 }
  0x4e   : > { %504 = vmatprep.subr.mxu0 %v746_v0 }
  0x4f   : > { %505 = vmatpush3.msra.mxu0 %v244_v9 }
  0x50   : > { %506 = vmatprep.subr.mxu0 %v746_v0 }
  0x51   : > { %507 = vmatpush3.msra.mxu0 %v243_v10 }
  0x52   : > { %508 = vmatprep.subr.mxu0 %v746_v0 }
  0x53   : > { %509 = vmatpush3.msra.mxu0 %v242_v11 }
  0x54   : > { %510 = vmatprep.subr.mxu0 %v746_v0 }
  0x55   : > { %511 = vmatpush3.msra.mxu0 %v241_v12 }
  0x56   : > { %512 = vmatprep.subr.mxu0 %v746_v0 }
  0x57   : > { %513 = vmatpush3.msra.mxu0 %v240_v13 }
  0x58   : > { %514 = vmatprep.subr.mxu0 %v746_v0 }
  0x59   : > { %515 = vmatpush3.msra.mxu0 %v239_v14 }
  0x5a   : > { %516 = vmatprep.subr.mxu0 %v746_v0 }
  0x5b   : > { %517 = vmatpush3.msra.mxu0 %v238_v15 }
  0x5c   : > { %518 = vmatprep.subr.mxu0 %v746_v0 }
  0x5d   : > { %519 = vmatpush3.msra.mxu0 %v237_v16 }
  0x5e   : > { %521 = vmatmul.mubr.f32.vlgmr.msra.gmra.mxu0 %v236_v17 }
 0x11e   : > { %v326_v19 = vpop.f32.mrf.mxu0 }
 0x11f   : > { %v327_v20 = vadd.f32 %v466_v18, %v326_v19 }
 0x120   : > { %v522_v21 = vpop.f32.mrf.mxu0 }
 0x121   : > { %v331_v22 = vmul.f32 0.70710677, %v327_v20  ;;  %v330_v24 = vmul.f32 0.5, %v327_v20 }
 0x123   : > { %600 = verf.f32 %v331_v22 }
 0x130   : > { %v601_v23 = vpop.eup %600 }
 0x131   : > { %v333_v25 = vadd.f32 1.0, %v601_v23 }
 0x133   : > { %v334_v26 = vmul.f32 %v333_v25, %v330_v24 }
 0x135   : > { %335 = vst [vmem:[%s232_s27] sm:$0xff] %v334_v26 }
 0x136   : > { %669 = shalt.err (!%p666_p5)
}
 0x137   : > { %s670_s25 = scalar_lea.hbm %s349_s21, 128  ;;  %s674_s18 = scalar_lea.hbm %s949_s3, 256 }
 0x138   : > { %p671_p7 = scmp.ne.s32.totalorder %s349_s21, %s670_s25  ;;  %p675_p9 = scmp.lt.s32.totalorder %s349_s21, %s949_s3 }
 0x139   : > { %p676_p11 = scmp.lt.s32.totalorder %s674_s18, %s670_s25 }
 0x13a   : > { %p672_p6 = pnand %p671_p7, %p856_p13 }
 0x13b   : > { %p677_p12 = por %p676_p11, %p675_p9 }
 0x13c   : > { %p673_p4 = pneg %p672_p6 }
 0x13e   : > { %p678_p1 = pnand %p677_p12, %p673_p4 }
 0x140   : > { %681 = shalt.err (!%p678_p1)
}
 0x141   : > { %529 = dma.vmem_to_hbm [thread:$0]  (%p856_p13), %s352_s29, 128, %s349_s21, %s337_s5  }
 0x142 PF: > { %s363_s22 = sand.u32 1, %s720_s12   ;;  %p961_p8 = scmp.ne.s32.totalorder %s954_s23, 0 }
 0x143   : > { %p962_p10 = scmp.ge.s32.totalorder %s740_s17, 2  ;;  %s364_s24 = scalar_lea.sflag [#allocation4], %s363_s22 }
 0x145   : > { %p540_p0 = pnand %p962_p10, %p961_p8 }
 0x147   : > { %p541_p2 = pneg %p540_p0 }
 0x149   : > { %715 = dma.done.wait (%p541_p2), %s364_s24, 128  }
 0x14a   : > { %717 = vsyncadd (%p541_p2), %s364_s24, 4294967168  ;;  %s20_s17 = sadd.s32 1, %s740_s17   ;;  %s963_s12 = smov %s724_s13 }
 0x14b   : > { %p17_p3 = scmp.ge.s32.totalorder %s20_s17, 4   ;;  %s964_s13 = smov %s728_s14 }
 0x14c   : > { %s965_s14 = smov %s865_s19  ;;  %s966_s15 = smov %s736_s16 }
 0x14d   : > { %s967_s16 = smov %s969_s28  ;;  %19 = sbr.rel (!%p17_p3) target bundleno = 7 (0x7), region = 85 }
 0x152   :  { %369 = vsyncpa [#allocation3], 1 }
 0x153   :  { %371 = vsyncpa [#allocation3 + $0x1], 1 }
 0x154   :  { %372 = vsyncpa [#allocation6], 1 }
 0x155   :  { %373 = vsyncpa [#allocation4], 1 }
 0x156   :  { %375 = vsyncpa [#allocation4 + $0x1], 1 }

</bundles_post_ra>
